<compile_context>
chip_gen: v6e
topology: v6e:2x2x1
jax: 0.10.0
libtpu: 0.0.40
codegen_flags: <defaults>
</compile_context>

<pallas_src>
import functools

import jax
import jax.numpy as jnp
from jax.experimental import pallas as pl
from jax.experimental.pallas import tpu as pltpu

BN_EPS = 1e-5
LEAKY_SLOPE = 0.01
_LANE = 128


def _round_up(n, m):
    return ((n + m - 1) // m) * m


def _leaky(v):
    return jnp.where(v >= 0, v, LEAKY_SLOPE * v)


def _pad2(a, rows, cols):
    out = jnp.zeros((rows, cols), jnp.float32)
    return out.at[: a.shape[0], : a.shape[1]].set(a.astype(jnp.float32))


# --------------------------------------------------------------------------- #
# Kernel
# --------------------------------------------------------------------------- #
def _vae_kernel(x_ref, catb_ref, eps_ref,
                w1x_ref, w2_ref, wh_ref, w3_ref, w4_ref, wt_ref, slab_ref,
                mulogvar_ref, recon_ref, *, din_p, hid_p, lat_p):
    def mm(h, w_ref):
        return jnp.dot(h, w_ref[...], preferred_element_type=jnp.float32)

    # Packed per-feature bias slab (one DMA); all slices start at 128-lane
    # multiples so reads are unmasked.
    b2 = slab_ref[0:1, 0:hid_p]
    bh = slab_ref[1:2, 0:2 * lat_p]
    b3 = slab_ref[2:3, 0:hid_p]
    b4 = slab_ref[3:4, 0:hid_p]
    bt = slab_ref[4:5, 0:din_p]

    # ---------------- encode ----------------
    h = _leaky(mm(x_ref[...], w1x_ref) + catb_ref[...])   # fc1 (embedding folded to per-row bias)
    h = _leaky(mm(h, w2_ref) + b2)                         # fc2 + leaky_relu
    # dropout: eval-mode identity
    ml = mm(h, wh_ref) + bh                                # bn1 + residual attn + fc21|fc22 folded
    mulogvar_ref[...] = ml                                 # single lane-dense store (B, 2*lat_p)

    # ---------------- reparameterize ----------------
    mu = ml[:, 0:lat_p]
    lv = ml[:, lat_p:2 * lat_p]
    z = mu + eps_ref[...] * jnp.exp(0.5 * jnp.clip(lv, -10.0, 10.0))

    # ---------------- decode ----------------
    h = _leaky(mm(z, w3_ref) + b3)                         # fc3 + leaky_relu
    h = _leaky(mm(h, w4_ref) + b4)                         # fc4 + leaky_relu
    # dropout: eval-mode identity
    recon_ref[...] = mm(h, wt_ref) + bt                    # bn2 + residual attn + fc5 folded


# --------------------------------------------------------------------------- #
# Host-side parameter folding / padding (done once, outside the hot path)
# --------------------------------------------------------------------------- #
def prepare_kernel_params(p):
    input_dim = p["w5"].shape[1]
    hidden = p["w2"].shape[0]
    latent = p["w21"].shape[1]

    din_p = _round_up(input_dim, _LANE)
    hid_p = _round_up(hidden, _LANE)
    lat_p = _round_up(latent, _LANE)
    slab_w = max(hid_p, din_p, 2 * lat_p)

    # length-1-sequence attention + residual:  h + attn(h) = h @ M + b_res
    M = jnp.eye(hidden, dtype=jnp.float32) + p["wv"] @ p["wo"]
    b_res = p["bv"] @ p["wo"] + p["bo"]                       # (1, hidden)

    # eval-mode BatchNorm affine fold
    s1 = p["bn1_gamma"] / jnp.sqrt(p["bn1_var"] + BN_EPS)
    t1 = p["bn1_beta"] - p["bn1_mean"] * s1
    s2 = p["bn2_gamma"] / jnp.sqrt(p["bn2_var"] + BN_EPS)
    t2 = p["bn2_beta"] - p["bn2_mean"] * s2

    # fc1 split: x-part weight; embedding part folded into a per-category bias table
    w1x = p["w1"][:input_dim, :]
    cat_bias = p["embedding"] @ p["w1"][input_dim:, :] + p["b1"]   # (num_cat, hidden)

    # Fold BN1 + attention residual into the (mu|logvar) head, BN2 + attention
    # residual into the decoder tail:
    #   h_out = (h_pre*s + t) @ M + b_res  ==>  h_pre @ (diag(s) M) + (t@M + b_res)
    M1 = s1[0][:, None] * M
    c1 = t1 @ M + b_res
    M2 = s2[0][:, None] * M
    c2 = t2 @ M + b_res

    w_mu = M1 @ p["w21"]
    w_lv = M1 @ p["w22"]
    b_mu = c1 @ p["w21"] + p["b21"]
    b_lv = c1 @ p["w22"] + p["b22"]
    w_tail = M2 @ p["w5"]
    b_tail = c2 @ p["w5"] + p["b5"]

    w_head = jnp.zeros((hid_p, 2 * lat_p), jnp.float32)
    w_head = w_head.at[:hidden, :latent].set(w_mu)
    w_head = w_head.at[:hidden, lat_p:lat_p + latent].set(w_lv)

    slab = jnp.zeros((8, slab_w), jnp.float32)
    slab = slab.at[0, :hidden].set(p["b2"][0])
    slab = slab.at[1, :latent].set(b_mu[0])
    slab = slab.at[1, lat_p:lat_p + latent].set(b_lv[0])
    slab = slab.at[2, :hidden].set(p["b3"][0])
    slab = slab.at[3, :hidden].set(p["b4"][0])
    slab = slab.at[4, :input_dim].set(b_tail[0])

    return {
        "input_dim": input_dim, "hidden": hidden, "latent": latent,
        "din_p": din_p, "hid_p": hid_p, "lat_p": lat_p,
        "w1x": _pad2(w1x, din_p, hid_p),
        "w2": _pad2(p["w2"], hid_p, hid_p),
        "w_head": w_head,
        "w3": _pad2(p["w3"], lat_p, hid_p),
        "w4": _pad2(p["w4"], hid_p, hid_p),
        "w_tail": _pad2(w_tail, hid_p, din_p),
        "cat_bias": _pad2(cat_bias, cat_bias.shape[0], hid_p),
        "slab": slab,
    }


# --------------------------------------------------------------------------- #
# Forward wrapper
# --------------------------------------------------------------------------- #
def vae_forward(kp, x, category, eps, *, b_tile_max=256):
    """x: (B, input_dim) f32, category: (B,) int32, eps: (B, latent_dim) f32."""
    B = x.shape[0]
    din_p, hid_p, lat_p = kp["din_p"], kp["hid_p"], kp["lat_p"]
    input_dim, latent = kp["input_dim"], kp["latent"]

    b_tile = min(b_tile_max, _round_up(B, 8))
    b_pad = _round_up(B, b_tile)
    nb = b_pad // b_tile

    # Padded, lane-dense activations (padding lanes are zero and stay zero).
    x_p = jnp.zeros((b_pad, din_p), jnp.float32).at[:B, :input_dim].set(x)
    catb = jnp.zeros((b_pad, hid_p), jnp.float32).at[:B].set(
        jnp.take(kp["cat_bias"], category, axis=0))
    eps_p = jnp.zeros((b_pad, lat_p), jnp.float32).at[:B, :latent].set(eps)

    kernel = functools.partial(_vae_kernel, din_p=din_p, hid_p=hid_p, lat_p=lat_p)

    def batch_spec(width):
        return pl.BlockSpec((b_tile, width), lambda i: (i, 0))

    def full_spec(arr):
        # Same block index every grid step -> weights stay resident in VMEM.
        return pl.BlockSpec(arr.shape, lambda i: (0, 0))

    mulogvar, recon_p = pl.pallas_call(
        kernel,
        out_shape=(
            jax.ShapeDtypeStruct((b_pad, 2 * lat_p), jnp.float32),
            jax.ShapeDtypeStruct((b_pad, din_p), jnp.float32),
        ),
        grid=(nb,),
        in_specs=[
            batch_spec(din_p),            # x
            batch_spec(hid_p),            # per-row fc1 bias (embedding folded)
            batch_spec(lat_p),            # eps
            full_spec(kp["w1x"]), full_spec(kp["w2"]), full_spec(kp["w_head"]),
            full_spec(kp["w3"]), full_spec(kp["w4"]), full_spec(kp["w_tail"]),
            full_spec(kp["slab"]),
        ],
        out_specs=(
            pl.BlockSpec((b_tile, 2 * lat_p), lambda i: (i, 0)),
            pl.BlockSpec((b_tile, din_p), lambda i: (i, 0)),
        ),
        compiler_params=pltpu.CompilerParams(
            dimension_semantics=("parallel",)),
    )(x_p, catb, eps_p,
      kp["w1x"], kp["w2"], kp["w_head"], kp["w3"], kp["w4"], kp["w_tail"],
      kp["slab"])

    recon = recon_p[:B, :input_dim]
    mu = mulogvar[:B, :latent]
    logvar = mulogvar[:B, lat_p:lat_p + latent]
    return recon, mu, logvar


# --------------------------------------------------------------------------- #
# Synthetic parameters + pure-JAX reference
# --------------------------------------------------------------------------- #
def init_params(key, input_dim, hidden_dim, latent_dim, num_categories, embedding_dim):
    """Deterministic synthetic parameters, PyTorch-style uniform(+-1/sqrt(fan_in)).

    Linear weights are stored transposed: shape (in, out) == W^T of nn.Linear.
    Biases / BN params are stored as (1, out) rows.
    """
    keys = iter(jax.random.split(key, 64))

    def lin(in_f, out_f):
        k = 1.0 / jnp.sqrt(jnp.float32(in_f))
        w = jax.random.uniform(next(keys), (in_f, out_f), jnp.float32, -k, k)
        b = jax.random.uniform(next(keys), (1, out_f), jnp.float32, -k, k)
        return w, b

    p = {}
    p["embedding"] = jax.random.normal(next(keys), (num_categories, embedding_dim), jnp.float32)
    p["w1"], p["b1"] = lin(input_dim + embedding_dim, hidden_dim)
    p["w2"], p["b2"] = lin(hidden_dim, hidden_dim)
    p["w21"], p["b21"] = lin(hidden_dim, latent_dim)
    p["w22"], p["b22"] = lin(hidden_dim, latent_dim)
    p["w3"], p["b3"] = lin(latent_dim, hidden_dim)
    p["w4"], p["b4"] = lin(hidden_dim, hidden_dim)
    p["w5"], p["b5"] = lin(hidden_dim, input_dim)
    # MultiheadAttention: only the V slice of in_proj and out_proj matter for seq_len == 1.
    p["wv"], p["bv"] = lin(hidden_dim, hidden_dim)
    p["wo"], p["bo"] = lin(hidden_dim, hidden_dim)
    # BatchNorm affine params (perturbed deterministically) + default running stats.
    p["bn1_gamma"] = 1.0 + 0.1 * jax.random.normal(next(keys), (1, hidden_dim), jnp.float32)
    p["bn1_beta"] = 0.1 * jax.random.normal(next(keys), (1, hidden_dim), jnp.float32)
    p["bn2_gamma"] = 1.0 + 0.1 * jax.random.normal(next(keys), (1, hidden_dim), jnp.float32)
    p["bn2_beta"] = 0.1 * jax.random.normal(next(keys), (1, hidden_dim), jnp.float32)
    p["bn1_mean"] = jnp.zeros((1, hidden_dim), jnp.float32)
    p["bn1_var"] = jnp.ones((1, hidden_dim), jnp.float32)
    p["bn2_mean"] = jnp.zeros((1, hidden_dim), jnp.float32)
    p["bn2_var"] = jnp.ones((1, hidden_dim), jnp.float32)
    return p


def vae_forward_ref(params, x, category, eps):
    """Pure-JAX reference with identical (eval-mode, unfolded) semantics."""
    emb = params["embedding"][category]
    h = jnp.concatenate([x, emb], axis=1)

    def lin(h, w, b):
        return h @ w + b

    def bn(h, g, b, m, v):
        return (h - m) / jnp.sqrt(v + BN_EPS) * g + b

    def attn(h):
        return lin(lin(h, params["wv"], params["bv"]), params["wo"], params["bo"])

    h1 = _leaky(lin(h, params["w1"], params["b1"]))
    h1 = bn(_leaky(lin(h1, params["w2"], params["b2"])),
            params["bn1_gamma"], params["bn1_beta"], params["bn1_mean"], params["bn1_var"])
    h1 = h1 + attn(h1)
    mu = lin(h1, params["w21"], params["b21"])
    logvar = lin(h1, params["w22"], params["b22"])
    z = mu + eps * jnp.exp(0.5 * jnp.clip(logvar, -10.0, 10.0))
    h3 = _leaky(lin(z, params["w3"], params["b3"]))
    h3 = bn(_leaky(lin(h3, params["w4"], params["b4"])),
            params["bn2_gamma"], params["bn2_beta"], params["bn2_mean"], params["bn2_var"])
    h3 = h3 + attn(h3)
    recon = lin(h3, params["w5"], params["b5"])
    return recon, mu, logvar


if __name__ == "__main__":
    # Small shapes consistent with the module; hidden_dim divisible by 8 heads.
    B = 16
    INPUT_DIM = 16
    HIDDEN_DIM = 32
    LATENT_DIM = 8
    NUM_CATEGORIES = 10
    EMBEDDING_DIM = 8

    root = jax.random.PRNGKey(0)
    k_params, k_x, k_cat, k_eps = jax.random.split(root, 4)

    params = init_params(k_params, INPUT_DIM, HIDDEN_DIM, LATENT_DIM,
                         NUM_CATEGORIES, EMBEDDING_DIM)
    x = jax.random.normal(k_x, (B, INPUT_DIM), jnp.float32)
    category = jax.random.randint(k_cat, (B,), 0, NUM_CATEGORIES, dtype=jnp.int32)
    eps = jax.random.normal(k_eps, (B, LATENT_DIM), jnp.float32)

    kp = prepare_kernel_params(params)
    # b_tile_max=8 -> 2-block batch grid, exercising the pipelined "parallel" axis.
    fwd = jax.jit(functools.partial(vae_forward, kp, b_tile_max=8))
    recon, mu, logvar = fwd(x, category, eps)
    jax.block_until_ready((recon, mu, logvar))

    recon_r, mu_r, logvar_r = vae_forward_ref(params, x, category, eps)
    assert recon.shape == (B, INPUT_DIM)
    assert mu.shape == (B, LATENT_DIM) and logvar.shape == (B, LATENT_DIM)
    assert jnp.allclose(recon, recon_r, atol=1e-4, rtol=1e-4)
    assert jnp.allclose(mu, mu_r, atol=1e-4, rtol=1e-4)
    assert jnp.allclose(logvar, logvar_r, atol=1e-4, rtol=1e-4)

    print("KERNEL_OK")
</pallas_src>

<mosaic_0001>
module attributes {stable_mosaic.version = 11 : i64} {
  func.func @_vae_kernel(%arg0: i32, %arg1: memref<8x128xf32, #tpu.memory_space<vmem>>, %arg2: memref<8x128xf32, #tpu.memory_space<vmem>>, %arg3: memref<8x128xf32, #tpu.memory_space<vmem>>, %arg4: memref<128x128xf32, #tpu.memory_space<vmem>>, %arg5: memref<128x128xf32, #tpu.memory_space<vmem>>, %arg6: memref<128x256xf32, #tpu.memory_space<vmem>>, %arg7: memref<128x128xf32, #tpu.memory_space<vmem>>, %arg8: memref<128x128xf32, #tpu.memory_space<vmem>>, %arg9: memref<128x128xf32, #tpu.memory_space<vmem>>, %arg10: memref<8x256xf32, #tpu.memory_space<vmem>>, %arg11: memref<8x256xf32, #tpu.memory_space<vmem>>, %arg12: memref<8x128xf32, #tpu.memory_space<vmem>>) attributes {dimension_semantics = [#tpu.dimension_semantics<parallel>], iteration_bounds = array<i64: 2>, scalar_prefetch = 0 : i64, scratch_operands = 0 : i64, tpu.core_type = #tpu.core_type<tc>, window_params = [{transform_indices = @transform_0, window_bounds = array<i64: 8, 128>}, {transform_indices = @transform_1, window_bounds = array<i64: 8, 128>}, {transform_indices = @transform_2, window_bounds = array<i64: 8, 128>}, {pipeline_mode = #tpu.pipeline_mode<synchronous>, transform_indices = @transform_3, window_bounds = array<i64: 128, 128>}, {pipeline_mode = #tpu.pipeline_mode<synchronous>, transform_indices = @transform_4, window_bounds = array<i64: 128, 128>}, {pipeline_mode = #tpu.pipeline_mode<synchronous>, transform_indices = @transform_5, window_bounds = array<i64: 128, 256>}, {pipeline_mode = #tpu.pipeline_mode<synchronous>, transform_indices = @transform_6, window_bounds = array<i64: 128, 128>}, {pipeline_mode = #tpu.pipeline_mode<synchronous>, transform_indices = @transform_7, window_bounds = array<i64: 128, 128>}, {pipeline_mode = #tpu.pipeline_mode<synchronous>, transform_indices = @transform_8, window_bounds = array<i64: 128, 128>}, {pipeline_mode = #tpu.pipeline_mode<synchronous>, transform_indices = @transform_9, window_bounds = array<i64: 8, 256>}, {transform_indices = @transform_10, window_bounds = array<i64: 8, 256>}, {transform_indices = @transform_11, window_bounds = array<i64: 8, 128>}]} {
    %c0 = arith.constant 0 : index
    %c0_0 = arith.constant 0 : index
    %0 = vector.load %arg10[%c0, %c0_0] : memref<8x256xf32, #tpu.memory_space<vmem>>, vector<1x128xf32>
    %c1 = arith.constant 1 : index
    %c0_1 = arith.constant 0 : index
    %1 = vector.load %arg10[%c1, %c0_1] : memref<8x256xf32, #tpu.memory_space<vmem>>, vector<1x256xf32>
    %c2 = arith.constant 2 : index
    %c0_2 = arith.constant 0 : index
    %2 = vector.load %arg10[%c2, %c0_2] : memref<8x256xf32, #tpu.memory_space<vmem>>, vector<1x128xf32>
    %c3 = arith.constant 3 : index
    %c0_3 = arith.constant 0 : index
    %3 = vector.load %arg10[%c3, %c0_3] : memref<8x256xf32, #tpu.memory_space<vmem>>, vector<1x128xf32>
    %c4 = arith.constant 4 : index
    %c0_4 = arith.constant 0 : index
    %4 = vector.load %arg10[%c4, %c0_4] : memref<8x256xf32, #tpu.memory_space<vmem>>, vector<1x128xf32>
    %c0_5 = arith.constant 0 : index
    %c0_6 = arith.constant 0 : index
    %5 = vector.load %arg1[%c0_5, %c0_6] : memref<8x128xf32, #tpu.memory_space<vmem>>, vector<8x128xf32>
    %c0_7 = arith.constant 0 : index
    %c0_8 = arith.constant 0 : index
    %6 = vector.load %arg4[%c0_7, %c0_8] : memref<128x128xf32, #tpu.memory_space<vmem>>, vector<128x128xf32>
    %cst = arith.constant dense<0.000000e+00> : vector<8x128xf32>
    %7 = tpu.matmul %5, %6, %cst {dimension_numbers = #tpu.dot_dimension_numbers<[1], [0], [0], [1], [0, 0, 1, 1], [], []>} : vector<8x128xf32>, vector<128x128xf32>, vector<8x128xf32> -> vector<8x128xf32>
    %c0_9 = arith.constant 0 : index
    %c0_10 = arith.constant 0 : index
    %8 = vector.load %arg2[%c0_9, %c0_10] : memref<8x128xf32, #tpu.memory_space<vmem>>, vector<8x128xf32>
    %9 = arith.addf %7, %8 : vector<8x128xf32>
    %cst_11 = arith.constant 0.000000e+00 : f32
    %10 = vector.broadcast %cst_11 : f32 to vector<8x128xf32>
    %11 = arith.cmpf oge, %9, %10 : vector<8x128xf32>
    %cst_12 = arith.constant 0.00999999977 : f32
    %12 = vector.broadcast %cst_12 : f32 to vector<8x128xf32>
    %13 = arith.mulf %12, %9 : vector<8x128xf32>
    %14 = arith.select %11, %9, %13 : vector<8x128xi1>, vector<8x128xf32>
    %c0_13 = arith.constant 0 : index
    %c0_14 = arith.constant 0 : index
    %15 = vector.load %arg5[%c0_13, %c0_14] : memref<128x128xf32, #tpu.memory_space<vmem>>, vector<128x128xf32>
    %cst_15 = arith.constant dense<0.000000e+00> : vector<8x128xf32>
    %16 = tpu.matmul %14, %15, %cst_15 {dimension_numbers = #tpu.dot_dimension_numbers<[1], [0], [0], [1], [0, 0, 1, 1], [], []>} : vector<8x128xf32>, vector<128x128xf32>, vector<8x128xf32> -> vector<8x128xf32>
    %17 = vector.broadcast %0 : vector<1x128xf32> to vector<8x128xf32>
    %18 = arith.addf %16, %17 : vector<8x128xf32>
    %cst_16 = arith.constant 0.000000e+00 : f32
    %19 = vector.broadcast %cst_16 : f32 to vector<8x128xf32>
    %20 = arith.cmpf oge, %18, %19 : vector<8x128xf32>
    %cst_17 = arith.constant 0.00999999977 : f32
    %21 = vector.broadcast %cst_17 : f32 to vector<8x128xf32>
    %22 = arith.mulf %21, %18 : vector<8x128xf32>
    %23 = arith.select %20, %18, %22 : vector<8x128xi1>, vector<8x128xf32>
    %c0_18 = arith.constant 0 : index
    %c0_19 = arith.constant 0 : index
    %24 = vector.load %arg6[%c0_18, %c0_19] : memref<128x256xf32, #tpu.memory_space<vmem>>, vector<128x256xf32>
    %cst_20 = arith.constant dense<0.000000e+00> : vector<8x256xf32>
    %25 = tpu.matmul %23, %24, %cst_20 {dimension_numbers = #tpu.dot_dimension_numbers<[1], [0], [0], [1], [0, 0, 1, 1], [], []>} : vector<8x128xf32>, vector<128x256xf32>, vector<8x256xf32> -> vector<8x256xf32>
    %26 = vector.broadcast %1 : vector<1x256xf32> to vector<8x256xf32>
    %27 = arith.addf %25, %26 : vector<8x256xf32>
    %c0_21 = arith.constant 0 : index
    %c0_22 = arith.constant 0 : index
    %28 = vector.load %arg11[%c0_21, %c0_22] : memref<8x256xf32, #tpu.memory_space<vmem>>, vector<8x256xf32>
    tpu.vector_store %arg11[%c0_21, %c0_22], %27 {strides = array<i32>} : memref<8x256xf32, #tpu.memory_space<vmem>>, vector<8x256xf32>,
    %29 = vector.extract_strided_slice %27 {offsets = [0, 0], sizes = [8, 128], strides = [1, 1]} : vector<8x256xf32> to vector<8x128xf32>
    %30 = vector.extract_strided_slice %27 {offsets = [0, 128], sizes = [8, 128], strides = [1, 1]} : vector<8x256xf32> to vector<8x128xf32>
    %c0_23 = arith.constant 0 : index
    %c0_24 = arith.constant 0 : index
    %31 = vector.load %arg3[%c0_23, %c0_24] : memref<8x128xf32, #tpu.memory_space<vmem>>, vector<8x128xf32>
    %cst_25 = arith.constant -1.000000e+01 : f32
    %cst_26 = arith.constant 1.000000e+01 : f32
    %32 = vector.broadcast %cst_25 : f32 to vector<8x128xf32>
    %33 = arith.maximumf %32, %30 : vector<8x128xf32>
    %34 = vector.broadcast %cst_26 : f32 to vector<8x128xf32>
    %35 = arith.minimumf %34, %33 : vector<8x128xf32>
    %cst_27 = arith.constant 5.000000e-01 : f32
    %36 = vector.broadcast %cst_27 : f32 to vector<8x128xf32>
    %37 = arith.mulf %36, %35 : vector<8x128xf32>
    %38 = math.exp %37 : vector<8x128xf32>
    %39 = arith.mulf %31, %38 : vector<8x128xf32>
    %40 = arith.addf %29, %39 : vector<8x128xf32>
    %c0_28 = arith.constant 0 : index
    %c0_29 = arith.constant 0 : index
    %41 = vector.load %arg7[%c0_28, %c0_29] : memref<128x128xf32, #tpu.memory_space<vmem>>, vector<128x128xf32>
    %cst_30 = arith.constant dense<0.000000e+00> : vector<8x128xf32>
    %42 = tpu.matmul %40, %41, %cst_30 {dimension_numbers = #tpu.dot_dimension_numbers<[1], [0], [0], [1], [0, 0, 1, 1], [], []>} : vector<8x128xf32>, vector<128x128xf32>, vector<8x128xf32> -> vector<8x128xf32>
    %43 = vector.broadcast %2 : vector<1x128xf32> to vector<8x128xf32>
    %44 = arith.addf %42, %43 : vector<8x128xf32>
    %cst_31 = arith.constant 0.000000e+00 : f32
    %45 = vector.broadcast %cst_31 : f32 to vector<8x128xf32>
    %46 = arith.cmpf oge, %44, %45 : vector<8x128xf32>
    %cst_32 = arith.constant 0.00999999977 : f32
    %47 = vector.broadcast %cst_32 : f32 to vector<8x128xf32>
    %48 = arith.mulf %47, %44 : vector<8x128xf32>
    %49 = arith.select %46, %44, %48 : vector<8x128xi1>, vector<8x128xf32>
    %c0_33 = arith.constant 0 : index
    %c0_34 = arith.constant 0 : index
    %50 = vector.load %arg8[%c0_33, %c0_34] : memref<128x128xf32, #tpu.memory_space<vmem>>, vector<128x128xf32>
    %cst_35 = arith.constant dense<0.000000e+00> : vector<8x128xf32>
    %51 = tpu.matmul %49, %50, %cst_35 {dimension_numbers = #tpu.dot_dimension_numbers<[1], [0], [0], [1], [0, 0, 1, 1], [], []>} : vector<8x128xf32>, vector<128x128xf32>, vector<8x128xf32> -> vector<8x128xf32>
    %52 = vector.broadcast %3 : vector<1x128xf32> to vector<8x128xf32>
    %53 = arith.addf %51, %52 : vector<8x128xf32>
    %cst_36 = arith.constant 0.000000e+00 : f32
    %54 = vector.broadcast %cst_36 : f32 to vector<8x128xf32>
    %55 = arith.cmpf oge, %53, %54 : vector<8x128xf32>
    %cst_37 = arith.constant 0.00999999977 : f32
    %56 = vector.broadcast %cst_37 : f32 to vector<8x128xf32>
    %57 = arith.mulf %56, %53 : vector<8x128xf32>
    %58 = arith.select %55, %53, %57 : vector<8x128xi1>, vector<8x128xf32>
    %c0_38 = arith.constant 0 : index
    %c0_39 = arith.constant 0 : index
    %59 = vector.load %arg9[%c0_38, %c0_39] : memref<128x128xf32, #tpu.memory_space<vmem>>, vector<128x128xf32>
    %cst_40 = arith.constant dense<0.000000e+00> : vector<8x128xf32>
    %60 = tpu.matmul %58, %59, %cst_40 {dimension_numbers = #tpu.dot_dimension_numbers<[1], [0], [0], [1], [0, 0, 1, 1], [], []>} : vector<8x128xf32>, vector<128x128xf32>, vector<8x128xf32> -> vector<8x128xf32>
    %61 = vector.broadcast %4 : vector<1x128xf32> to vector<8x128xf32>
    %62 = arith.addf %60, %61 : vector<8x128xf32>
    %c0_41 = arith.constant 0 : index
    %c0_42 = arith.constant 0 : index
    %63 = vector.load %arg12[%c0_41, %c0_42] : memref<8x128xf32, #tpu.memory_space<vmem>>, vector<8x128xf32>
    tpu.vector_store %arg12[%c0_41, %c0_42], %62 {strides = array<i32>} : memref<8x128xf32, #tpu.memory_space<vmem>>, vector<8x128xf32>,
    return
  }
  func.func @transform_0(%arg0: i32) -> (i32, i32) {
    %c0_i32 = arith.constant 0 : i32
    %c0_i32_0 = arith.constant 0 : i32
    return %arg0, %c0_i32 : i32, i32
  }
  func.func @transform_1(%arg0: i32) -> (i32, i32) {
    %c0_i32 = arith.constant 0 : i32
    %c0_i32_0 = arith.constant 0 : i32
    return %arg0, %c0_i32 : i32, i32
  }
  func.func @transform_2(%arg0: i32) -> (i32, i32) {
    %c0_i32 = arith.constant 0 : i32
    %c0_i32_0 = arith.constant 0 : i32
    return %arg0, %c0_i32 : i32, i32
  }
  func.func @transform_3(%arg0: i32) -> (i32, i32) {
    %c0_i32 = arith.constant 0 : i32
    %c0_i32_0 = arith.constant 0 : i32
    %c0_i32_1 = arith.constant 0 : i32
    return %c0_i32, %c0_i32_0 : i32, i32
  }
  func.func @transform_4(%arg0: i32) -> (i32, i32) {
    %c0_i32 = arith.constant 0 : i32
    %c0_i32_0 = arith.constant 0 : i32
    %c0_i32_1 = arith.constant 0 : i32
    return %c0_i32, %c0_i32_0 : i32, i32
  }
  func.func @transform_5(%arg0: i32) -> (i32, i32) {
    %c0_i32 = arith.constant 0 : i32
    %c0_i32_0 = arith.constant 0 : i32
    %c0_i32_1 = arith.constant 0 : i32
    return %c0_i32, %c0_i32_0 : i32, i32
  }
  func.func @transform_6(%arg0: i32) -> (i32, i32) {
    %c0_i32 = arith.constant 0 : i32
    %c0_i32_0 = arith.constant 0 : i32
    %c0_i32_1 = arith.constant 0 : i32
    return %c0_i32, %c0_i32_0 : i32, i32
  }
  func.func @transform_7(%arg0: i32) -> (i32, i32) {
    %c0_i32 = arith.constant 0 : i32
    %c0_i32_0 = arith.constant 0 : i32
    %c0_i32_1 = arith.constant 0 : i32
    return %c0_i32, %c0_i32_0 : i32, i32
  }
  func.func @transform_8(%arg0: i32) -> (i32, i32) {
    %c0_i32 = arith.constant 0 : i32
    %c0_i32_0 = arith.constant 0 : i32
    %c0_i32_1 = arith.constant 0 : i32
    return %c0_i32, %c0_i32_0 : i32, i32
  }
  func.func @transform_9(%arg0: i32) -> (i32, i32) {
    %c0_i32 = arith.constant 0 : i32
    %c0_i32_0 = arith.constant 0 : i32
    %c0_i32_1 = arith.constant 0 : i32
    return %c0_i32, %c0_i32_0 : i32, i32
  }
  func.func @transform_10(%arg0: i32) -> (i32, i32) {
    %c0_i32 = arith.constant 0 : i32
    %c0_i32_0 = arith.constant 0 : i32
    return %arg0, %c0_i32 : i32, i32
  }
  func.func @transform_11(%arg0: i32) -> (i32, i32) {
    %c0_i32 = arith.constant 0 : i32
    %c0_i32_0 = arith.constant 0 : i32
    return %arg0, %c0_i32 : i32, i32
  }
}

</mosaic_0001>

<bundles_post_ra>
// kernel: vae_forward.1
= control target key start
LH: loop header
LB: loop body
LE: loop exit
PB: predicated region body
PF: predicated region fallthrough
CT: control target
= control target key end

     0   :  { %s2310_s0 = inlined_call_operand.vmem [shape: f32[16,128], index: 0, kind: input, shape index: {}]   ;;  %s2311_s1 = inlined_call_operand.vmem [shape: f32[16,128], index: 1, kind: input, shape index: {}]   ;;  %s2312_s2 = inlined_call_operand.vmem [shape: f32[16,128], index: 2, kind: input, shape index: {}]   ;;  %s2313_s3 = inlined_call_operand.hbm [shape: f32[128,128], index: 3, kind: input, shape index: {}]   ;;  %s2314_s4 = inlined_call_operand.hbm [shape: f32[128,128], index: 4, kind: input, shape index: {}]   ;;  %s2315_s5 = inlined_call_operand.vmem [shape: f32[128,256], index: 5, kind: input, shape index: {}]   ;;  %s2316_s6 = inlined_call_operand.hbm [shape: f32[128,128], index: 6, kind: input, shape index: {}]   ;;  %s2317_s7 = inlined_call_operand.hbm [shape: f32[128,128], index: 7, kind: input, shape index: {}]   ;;  %s2318_s8 = inlined_call_operand.hbm [shape: f32[128,128], index: 8, kind: input, shape index: {}]   ;;  %s2319_s9 = inlined_call_operand.vmem [shape: f32[8,256], index: 9, kind: input, shape index: {}]   ;;  %s2320_s10 = inlined_call_operand.vmem [shape: f32[16,256], index: 10, kind: output, shape index: {0}]   ;;  %s2321_s11 = inlined_call_operand.hbm [shape: f32[16,128], index: 11, kind: output, shape index: {1}]  }
   0x1   :  { %2326 = sst [smem:[#allocation19_spill]] %s2314_s4 }
   0x2   :  { %17 = vsyncpa [#allocation3], 0 }
   0x3   :  { %18 = vsyncpa [#allocation6], 0 }
   0x4   :  { %19 = vsyncpa [#allocation9], 0 }
   0x5   :  { %20 = vsyncpa [#allocation4], 0 }
   0x6   :  { %22 = vsyncpa [#allocation4 + $0x1], 0  ;;  %s1914_s17 = smov 0   ;;  %s1916_s18 = smov 0  }
   0x7   :  { %s1918_s19 = smov 0   ;;  %s1920_s20 = smov 0  }
   0x8 LB: > { %2327 = sst [smem:[#allocation16_spill]] %s1838_s19  ;;  %s1935_s21 = sadd.s32 4294967295, %s1842_s20   ;;  %s1842_s20 = sphi %s1920_s20, %s2342_s20   ;;  %s1838_s19 = sphi %s1918_s19, %s2344_s19   ;;  %s1834_s18 = sphi %s1916_s18, %s2346_s18   ;;  %s1830_s17 = sphi %s1914_s17, %s2345_s17  }
   0x9   : > { %s1257_s22 = sadd.s32 4294967294, %s1842_s20   ;;  %s1939_s23 = sadd.s32 1, %s1842_s20  }
   0xa   : > { %2328 = sst [smem:[#allocation17_spill]] %s1939_s23  ;;  %s286_s24 = sadd.s32 1, %s1838_s19 }
   0xb   : > { %s283_s25 = ssub.s32 %s1842_s20, %s1939_s23  ;;  %p296_p0 = scmp.ne.s32.totalorder %s1838_s19, %s1834_s18 }
   0xc   : > { %p284_p1 = scmp.eq.s32.totalorder %s283_s25, 0  ;;  %p297_p2 = scmp.eq.s32.totalorder %s1935_s21, 1 }
   0xd   : > { %p302_p3 = scmp.ne.s32.totalorder %s1834_s18, %s1830_s17  ;;  %p303_p4 = scmp.eq.s32.totalorder %s1257_s22, 1 }
   0xe   : > { %s1950_s26 = scalar_select %p284_p1, %s1838_s19, %s286_s24  }
   0xf   : > { %p1952_p5 = por %p297_p2, %p296_p0  ;;  %p1956_p6 = por %p303_p4, %p302_p3 }
  0x10   : > { %2329 = sst [smem:[#allocation18_spill]] %s1950_s26  ;;  %p1258_p7 = scmp.ge.s32.totalorder %s1842_s20, 1 }
  0x11   : > { %p310_p8 = scmp.lt.s32.totalorder %s1842_s20, 3  ;;  %p2325_p9 = scmp.eq.s32.totalorder %s1935_s21, 0 }
  0x12   : > { %s1844_s30 = smov [#allocation5]   ;;  %s1845_s14 = smov [#allocation8]  }
  0x13   : > { %p1963_p10 = pnand %p1258_p7, %p310_p8  ;;  %s335_s12 = sshll.u32 %s1844_s30, 4  ;;  %s336_s12 = int_to_ptr.vmem [resolvable:$true] %s335_s12 }
  0x14   : > { %s364_s15 = sshll.u32 %s1845_s14, 4  ;;  %s1846_s16 = smov [#allocation2]   ;;  %s365_s15 = int_to_ptr.vmem [resolvable:$true] %s364_s15 }
  0x15   : > { %p1566_p11 = pneg %p1963_p10  ;;  %s322_s22 = sshll.u32 %s1846_s16, 4  ;;  %s323_s22 = int_to_ptr.vmem [resolvable:$true] %s322_s22 }
  0x16   : > { %s1651_s25 = scalar_lea.vmem %s336_s12, 2048  ;;  %p1659_p3 = scmp.lt.s32.totalorder %s336_s12, %s336_s12 }
  0x17   : > { %p1971_p12 = pnand %p2325_p9, %p1566_p11  ;;  %p1652_p0 = scmp.ne.s32.totalorder %s336_s12, %s1651_s25 }
  0x18   : > { %p1660_p4 = scmp.lt.s32.totalorder %s1651_s25, %s1651_s25 }
  0x19   : > { %p1977_p13 = pneg %p1971_p12 }
  0x1a   : > { %p1661_p7 = por %p1660_p4, %p1659_p3 }
  0x1b   : > { %p1654_p1 = pnand %p1652_p0, %p1977_p13 }
  0x1d   : > { %p1655_p2 = pneg %p1654_p1 }
  0x1f   : > { %p1662_p8 = pnand %p1661_p7, %p1655_p2 }
  0x21   : > { %1665 = shalt.err (!%p1662_p8)
}
  0x22   : > { %s1847_s30 = smov 128   ;;  %s1848_s14 = smov 8  }
  0x23   : > { %s2335_s4 = sld [smem:[#allocation19_spill]]  ;;  %s1677_s19 = scalar_lea.vmem %s365_s15, 2048 }
  0x24   : > { %p1678_p11 = scmp.ne.s32.totalorder %s365_s15, %s1677_s19  ;;  %p1685_p3 = scmp.lt.s32.totalorder %s365_s15, %s365_s15 }
  0x25   : > { %p1686_p2 = scmp.lt.s32.totalorder %s1677_s19, %s1677_s19 }
  0x26   : > { %p1680_p0 = pnand %p1678_p11, %p1977_p13 }
  0x27   : > { %p1687_p4 = por %p1686_p2, %p1685_p3 }
  0x28   : > { %p1681_p1 = pneg %p1680_p0 }
  0x29   : > { %1572 = dma.hbm_to_vmem [thread:$0]  (!%p1971_p12), %s2335_s4, 2048, %s336_s12, [#allocation6], %s1847_s30, %s1847_s30, %s1848_s14  }
  0x2a   : > { %p1688_p7 = pnand %p1687_p4, %p1681_p1 }
  0x2c   : > { %1691 = shalt.err (!%p1688_p7)
}
  0x2d   : > { %1578 = dma.hbm_to_vmem [thread:$0]  (!%p1971_p12), %s2317_s7, 2048, %s365_s15, [#allocation9], %s1847_s30, %s1847_s30, %s1848_s14  }
  0x2e   : > { %s1703_s26 = scalar_lea.vmem %s323_s22, 2048  ;;  %p1711_p9 = scmp.lt.s32.totalorder %s323_s22, %s323_s22 }
  0x2f   : > { %p1704_p8 = scmp.ne.s32.totalorder %s323_s22, %s1703_s26  ;;  %p1712_p3 = scmp.lt.s32.totalorder %s1703_s26, %s1703_s26 }
  0x31   : > { %p1706_p11 = pnand %p1704_p8, %p1977_p13  ;;  %p1713_p1 = por %p1712_p3, %p1711_p9 }
  0x33   : > { %p1707_p0 = pneg %p1706_p11 }
  0x35   : > { %p1714_p2 = pnand %p1713_p1, %p1707_p0 }
  0x37   : > { %1717 = shalt.err (!%p1714_p2)
}
  0x38   : > { %1569 = dma.hbm_to_vmem [thread:$0]  (!%p1971_p12), %s2313_s3, 2048, %s323_s22, [#allocation3], %s1847_s30, %s1847_s30, %s1848_s14  }
  0x39   : > { %s1849_s12 = smov [#allocation7]   ;;  %s1850_s16 = smov [#allocation10]  }
  0x3a   : > { %s351_s15 = sshll.u32 %s1849_s12, 4  ;;  %s377_s25 = sshll.u32 %s1850_s16, 4  ;;  %s352_s15 = int_to_ptr.vmem [resolvable:$true] %s351_s15  ;;  %s378_s25 = int_to_ptr.vmem [resolvable:$true] %s377_s25 }
  0x3b   : > { %s1729_s4 = scalar_lea.vmem %s352_s15, 2048  ;;  %p1737_p8 = scmp.lt.s32.totalorder %s352_s15, %s352_s15 }
  0x3c   : > { %p1730_p4 = scmp.ne.s32.totalorder %s352_s15, %s1729_s4  ;;  %p1738_p11 = scmp.lt.s32.totalorder %s1729_s4, %s1729_s4 }
  0x3e   : > { %p1732_p9 = pnand %p1730_p4, %p1977_p13  ;;  %p1739_p0 = por %p1738_p11, %p1737_p8 }
  0x40   : > { %p1733_p7 = pneg %p1732_p9 }
  0x42   : > { %p1740_p3 = pnand %p1739_p0, %p1733_p7 }
  0x44   : > { %1743 = shalt.err (!%p1740_p3)
}
  0x45   : > { %1575 = dma.hbm_to_vmem [thread:$0]  (!%p1971_p12), %s2316_s6, 2048, %s352_s15, [#allocation6], %s1847_s30, %s1847_s30, %s1848_s14  }
  0x46   : > { %s1755_s19 = scalar_lea.vmem %s378_s25, 2048  ;;  %p1763_p9 = scmp.lt.s32.totalorder %s378_s25, %s378_s25 }
  0x47   : > { %p1756_p1 = scmp.ne.s32.totalorder %s378_s25, %s1755_s19  ;;  %p1764_p8 = scmp.lt.s32.totalorder %s1755_s19, %s1755_s19 }
  0x49   : > { %p1758_p2 = pnand %p1756_p1, %p1977_p13  ;;  %p1765_p7 = por %p1764_p8, %p1763_p9 }
  0x4b   : > { %p1759_p4 = pneg %p1758_p2 }
  0x4d   : > { %p1766_p11 = pnand %p1765_p7, %p1759_p4 }
  0x4f   : > { %1769 = shalt.err (!%p1766_p11)
}
  0x50   : > { %1581 = dma.hbm_to_vmem [thread:$0]  (!%p1971_p12), %s2318_s8, 2048, %s378_s25, [#allocation9], %s1847_s30, %s1847_s30, %s1848_s14  }
  0x51   : > { %417 = sbr.rel (%p1963_p10) target bundleno = 1349 (0x545), region = 60  ;;  %p2336_p13 = scmp.eq.s32.totalorder (!%p1963_p10), %s1935_s21, 0 }
  0x56   : > { %1813 = dma.done.wait (%p2336_p13), [#allocation3], 2048   ;;  %p2337_p0 = pmov %p2336_p13 }
  0x58   : > { %1815 = vsyncadd (%p2337_p0), [#allocation3], 4294965248  ;;  %p2338_p3 = pmov %p2337_p0 }
  0x59   : > { %p2339_p1 = pmov %p2337_p0 }
  0x5a   : > { %1817 = dma.done.wait (%p2338_p3), [#allocation6], 4096  }
  0x5b   : > { %1819 = vsyncadd (%p2339_p1), [#allocation6], 4294963200  ;;  %p2340_p2 = pmov %p2337_p0 }
  0x5c   : > { %p2341_p12 = pmov %p2337_p0 }
  0x5d   : > { %1821 = dma.done.wait (%p2340_p2), [#allocation9], 4096  }
  0x5e   : > { %1823 = vsyncadd (%p2341_p12), [#allocation9], 4294963200  ;;  %v1851_v0 = vmov 0.0   ;;  %vm1852_vm0 = vmmov 0   ;;  %v524_v1 = vld [vmem:[#allocation2 + $0x78] sm:$0xff]  ;;  %v523_v2 = vld [vmem:[#allocation2 + $0x70] sm:$0xff] }
  0x5f   : > { %1369 = vmatprep.subr.mxu0 %v1851_v0  ;;  %1401 = vmatprep.mubr.msk.f32.mxu0 %vm1852_vm0, %v1851_v0  ;;  %v522_v3 = vld [vmem:[#allocation2 + $0x68] sm:$0xff]  ;;  %v521_v4 = vld [vmem:[#allocation2 + $0x60] sm:$0xff]  ;;  %v520_v5 = vld [vmem:[#allocation2 + $0x58] sm:$0xff]  ;;  %p485_p10 = scmp.lt.s32.totalorder %s1935_s21, 1  ;;  %s482_s23 = sand.u32 1, %s1834_s18  }
  0x60   : > { %1404 = vmatprep.subr.mxu1 %v1851_v0  ;;  %1436 = vmatprep.mubr.msk.f32.mxu1 %vm1852_vm0, %v1851_v0  ;;  %v614_v6 = vld [vmem:[#allocation5 + $0x78] sm:$0xff]  ;;  %v613_v7 = vld [vmem:[#allocation5 + $0x70] sm:$0xff]  ;;  %v612_v9 = vld [vmem:[#allocation5 + $0x68] sm:$0xff]  ;;  %s1271_s24 = sshll.u32 %s482_s23, 3  ;;  %s1280_s12 = sshll.u32 %s1935_s21, 7 }
  0x61   : > { %1370 = vmatpush3.msra.mxu0 %v524_v1  ;;  %1405 = vmatpush3.msra.mxu1 %v614_v6  ;;  %v519_v8 = vld [vmem:[#allocation2 + $0x50] sm:$0xff]  ;;  %v518_v10 = vld [vmem:[#allocation2 + $0x48] sm:$0xff]  ;;  %v611_v11 = vld [vmem:[#allocation5 + $0x60] sm:$0xff]  ;;  %s2068_s29 = scalar_select %p485_p10, %s1935_s21, 1 }
  0x62   : > { %1371 = vmatprep.subr.mxu0 %v1851_v0  ;;  %1406 = vmatprep.subr.mxu1 %v1851_v0  ;;  %v517_v12 = vld [vmem:[#allocation2 + $0x40] sm:$0xff]  ;;  %v610_v13 = vld [vmem:[#allocation5 + $0x58] sm:$0xff]  ;;  %v609_v15 = vld [vmem:[#allocation5 + $0x50] sm:$0xff]  ;;  %s484_s15 = scalar_lea.vmem [#allocation11], %s1271_s24 }
  0x63   : > { %1372 = vmatpush3.msra.mxu0 %v523_v2  ;;  %1407 = vmatpush3.msra.mxu1 %v613_v7  ;;  %v516_v14 = vld [vmem:[#allocation2 + $0x38] sm:$0xff]  ;;  %v515_v16 = vld [vmem:[#allocation2 + $0x30] sm:$0xff]  ;;  %v608_v17 = vld [vmem:[#allocation5 + $0x48] sm:$0xff]  ;;  %s2075_s13 = sshll.u32 %s2068_s29, 3 }
  0x64   : > { %1373 = vmatprep.subr.mxu0 %v1851_v0  ;;  %1408 = vmatprep.subr.mxu1 %v1851_v0  ;;  %v514_v18 = vld [vmem:[#allocation2 + $0x28] sm:$0xff]  ;;  %v607_v19 = vld [vmem:[#allocation5 + $0x40] sm:$0xff]  ;;  %v606_v21 = vld [vmem:[#allocation5 + $0x38] sm:$0xff]  ;;  %s488_s14 = scalar_lea.vmem %s2310_s0, %s2075_s13  ;;  %s492_s19 = scalar_lea.vmem %s2311_s1, %s2075_s13 }
  0x65   : > { %1374 = vmatpush3.msra.mxu0 %v522_v3  ;;  %1409 = vmatpush3.msra.mxu1 %v612_v9  ;;  %v513_v20 = vld [vmem:[#allocation2 + $0x20] sm:$0xff]  ;;  %v512_v22 = vld [vmem:[#allocation2 + $0x18] sm:$0xff]  ;;  %v605_v23 = vld [vmem:[#allocation5 + $0x30] sm:$0xff] }
  0x66   : > { %1375 = vmatprep.subr.mxu0 %v1851_v0  ;;  %1410 = vmatprep.subr.mxu1 %v1851_v0  ;;  %v511_v24 = vld [vmem:[#allocation2 + $0x10] sm:$0xff]  ;;  %v604_v25 = vld [vmem:[#allocation5 + $0x28] sm:$0xff]  ;;  %v603_v27 = vld [vmem:[#allocation5 + $0x20] sm:$0xff] }
  0x67   : > { %1376 = vmatpush3.msra.mxu0 %v521_v4  ;;  %1411 = vmatpush3.msra.mxu1 %v611_v11  ;;  %v510_v26 = vld [vmem:[#allocation2 + $0x8] sm:$0xff]  ;;  %v509_v28 = vld [vmem:[#allocation2] sm:$0xff]  ;;  %v602_v29 = vld [vmem:[#allocation5 + $0x18] sm:$0xff] }
  0x68   : > { %1377 = vmatprep.subr.mxu0 %v1851_v0  ;;  %1412 = vmatprep.subr.mxu1 %v1851_v0  ;;  %v508_v30 = vld [vmem:[%s488_s14] sm:$0xff]  ;;  %v601_v31 = vld [vmem:[#allocation5 + $0x10] sm:$0xff]  ;;  %v600_v32 = vld [vmem:[#allocation5 + $0x8] sm:$0xff]  ;;  %s1283_s14 = sshll.u32 %s2068_s29, 4  ;;  %s496_s29 = scalar_lea.vmem %s2312_s2, %s2075_s13 }
  0x69   : > { %1378 = vmatpush3.msra.mxu0 %v520_v5  ;;  %1413 = vmatpush3.msra.mxu1 %v610_v13  ;;  %v599_v33 = vld [vmem:[#allocation5] sm:$0xff]  ;;  %v719_v34 = vld [vmem:[%s2315_s5 + $0xf8] sm:$0xff]  ;;  %v718_v35 = vld [vmem:[%s2315_s5 + $0xf0] sm:$0xff]  ;;  %s501_s16 = scalar_lea.vmem %s2320_s10, %s1283_s14  ;;  %s1083_s13 = scalar_lea.sflag [#allocation4], %s482_s23 }
  0x6a   : > { %1379 = vmatprep.subr.mxu0 %v1851_v0  ;;  %1414 = vmatprep.subr.mxu1 %v1851_v0  ;;  %v717_v36 = vld [vmem:[%s2315_s5 + $0xe8] sm:$0xff]  ;;  %v716_v37 = vld [vmem:[%s2315_s5 + $0xe0] sm:$0xff]  ;;  %v715_v38 = vld [vmem:[%s2315_s5 + $0xd8] sm:$0xff] }
  0x6b   : > { %1380 = vmatpush3.msra.mxu0 %v519_v8  ;;  %1415 = vmatpush3.msra.mxu1 %v609_v15  ;;  %v714_v39 = vld [vmem:[%s2315_s5 + $0xd0] sm:$0xff]  ;;  %v713_v40 = vld [vmem:[%s2315_s5 + $0xc8] sm:$0xff]  ;;  %v712_v41 = vld [vmem:[%s2315_s5 + $0xc0] sm:$0xff] }
  0x6c   : > { %1381 = vmatprep.subr.mxu0 %v1851_v0  ;;  %1416 = vmatprep.subr.mxu1 %v1851_v0  ;;  %v711_v42 = vld [vmem:[%s2315_s5 + $0xb8] sm:$0xff]  ;;  %v710_v43 = vld [vmem:[%s2315_s5 + $0xb0] sm:$0xff]  ;;  %v709_v44 = vld [vmem:[%s2315_s5 + $0xa8] sm:$0xff] }
  0x6d   : > { %1382 = vmatpush3.msra.mxu0 %v518_v10  ;;  %1417 = vmatpush3.msra.mxu1 %v608_v17  ;;  %v708_v45 = vld [vmem:[%s2315_s5 + $0xa0] sm:$0xff]  ;;  %v707_v46 = vld [vmem:[%s2315_s5 + $0x98] sm:$0xff]  ;;  %v706_v47 = vld [vmem:[%s2315_s5 + $0x90] sm:$0xff] }
  0x6e   : > { %1383 = vmatprep.subr.mxu0 %v1851_v0  ;;  %1418 = vmatprep.subr.mxu1 %v1851_v0  ;;  %v705_v48 = vld [vmem:[%s2315_s5 + $0x88] sm:$0xff]  ;;  %v704_v49 = vld [vmem:[%s2315_s5 + $0x80] sm:$0xff]  ;;  %v703_v50 = vld [vmem:[%s2315_s5 + $0x78] sm:$0xff] }
  0x6f   : > { %1384 = vmatpush3.msra.mxu0 %v517_v12  ;;  %1419 = vmatpush3.msra.mxu1 %v607_v19  ;;  %v702_v51 = vld [vmem:[%s2315_s5 + $0x70] sm:$0xff]  ;;  %v701_v52 = vld [vmem:[%s2315_s5 + $0x68] sm:$0xff]  ;;  %v700_v53 = vld [vmem:[%s2315_s5 + $0x60] sm:$0xff] }
  0x70   : > { %1385 = vmatprep.subr.mxu0 %v1851_v0  ;;  %1420 = vmatprep.subr.mxu1 %v1851_v0  ;;  %v699_v54 = vld [vmem:[%s2315_s5 + $0x58] sm:$0xff]  ;;  %v698_v55 = vld [vmem:[%s2315_s5 + $0x50] sm:$0xff]  ;;  %v697_v56 = vld [vmem:[%s2315_s5 + $0x48] sm:$0xff] }
  0x71   : > { %1386 = vmatpush3.msra.mxu0 %v516_v14  ;;  %1421 = vmatpush3.msra.mxu1 %v606_v21  ;;  %v696_v57 = vld [vmem:[%s2315_s5 + $0x40] sm:$0xff]  ;;  %v695_v58 = vld [vmem:[%s2315_s5 + $0x38] sm:$0xff]  ;;  %v694_v59 = vld [vmem:[%s2315_s5 + $0x30] sm:$0xff] }
  0x72   : > { %1387 = vmatprep.subr.mxu0 %v1851_v0  ;;  %1422 = vmatprep.subr.mxu1 %v1851_v0  ;;  %v525_v60 = vld [vmem:[%s492_s19] sm:$0xff]  ;;  %v693_v3 = vld [vmem:[%s2315_s5 + $0x28] sm:$0xff]  ;;  %v691_v5 = vld [vmem:[%s2315_s5 + $0x18] sm:$0xff]  ;;  %s1853_s19 = smov [#allocation11]  }
  0x73   : > { %1388 = vmatpush3.msra.mxu0 %v515_v16  ;;  %1423 = vmatpush3.msra.mxu1 %v605_v23  ;;  %v692_v4 = vld [vmem:[%s2315_s5 + $0x20] sm:$0xff]  ;;  %v690_v6 = vld [vmem:[%s2315_s5 + $0x10] sm:$0xff]  ;;  %v689_v7 = vld [vmem:[%s2315_s5 + $0x8] sm:$0xff]  ;;  %s1774_s21 = sshll.u32 %s1853_s19, 4  ;;  %s1775_s21 = int_to_ptr.vmem [resolvable:$false] %s1774_s21 }
  0x74   : > { %1389 = vmatprep.subr.mxu0 %v1851_v0  ;;  %1424 = vmatprep.subr.mxu1 %v1851_v0  ;;  %v688_v8 = vld [vmem:[%s2315_s5] sm:$0xff]  ;;  %v827_v9 = vld [vmem:[#allocation7 + $0x78] sm:$0xff]  ;;  %v826_v16 = vld [vmem:[#allocation7 + $0x70] sm:$0xff]  ;;  %s1776_s4 = scalar_lea.vmem %s1775_s21, 256 }
  0x75   : > { %1390 = vmatpush3.msra.mxu0 %v514_v18  ;;  %1425 = vmatpush3.msra.mxu1 %v604_v25  ;;  %v502_v10 = vld [vmem:[%s2319_s9] ss:$0 sm:$0xff]  ;;  %v825_v17 = vld [vmem:[#allocation7 + $0x68] sm:$0xff]  ;;  %v823_v19 = vld [vmem:[#allocation7 + $0x58] sm:$0xff] }
  0x76   : > { %1391 = vmatprep.subr.mxu0 %v1851_v0  ;;  %1426 = vmatprep.subr.mxu1 %v1851_v0  ;;  %v824_v18 = vld [vmem:[#allocation7 + $0x60] sm:$0xff]  ;;  %v821_v21 = vld [vmem:[#allocation7 + $0x48] sm:$0xff]  ;;  %v819_v23 = vld [vmem:[#allocation7 + $0x38] sm:$0xff] }
  0x77   : > { %1392 = vmatpush3.msra.mxu0 %v513_v20  ;;  %1427 = vmatpush3.msra.mxu1 %v603_v27  ;;  %v822_v20 = vld [vmem:[#allocation7 + $0x50] sm:$0xff]  ;;  %v817_v25 = vld [vmem:[#allocation7 + $0x28] sm:$0xff]  ;;  %v815_v27 = vld [vmem:[#allocation7 + $0x18] sm:$0xff] }
  0x78   : > { %1393 = vmatprep.subr.mxu0 %v1851_v0  ;;  %1428 = vmatprep.subr.mxu1 %v1851_v0 }
  0x79   : > { %1394 = vmatpush3.msra.mxu0 %v512_v22  ;;  %1429 = vmatpush3.msra.mxu1 %v602_v29  ;;  %v820_v22 = vld [vmem:[#allocation7 + $0x40] sm:$0xff]  ;;  %v813_v29 = vld [vmem:[#allocation7 + $0x8] sm:$0xff] }
  0x7a   : > { %1395 = vmatprep.subr.mxu0 %v1851_v0  ;;  %1430 = vmatprep.subr.mxu1 %v1851_v0 }
  0x7b   : > { %1396 = vmatpush3.msra.mxu0 %v511_v24  ;;  %1431 = vmatpush3.msra.mxu1 %v601_v31  ;;  %v818_v24 = vld [vmem:[#allocation7 + $0x30] sm:$0xff]  ;;  %v916_v31 = vld [vmem:[#allocation8 + $0x78] sm:$0xff] }
  0x7c   : > { %1397 = vmatprep.subr.mxu0 %v1851_v0  ;;  %1432 = vmatprep.subr.mxu1 %v1851_v0 }
  0x7d   : > { %1398 = vmatpush3.msra.mxu0 %v510_v26  ;;  %1433 = vmatpush3.msra.mxu1 %v600_v32  ;;  %v816_v26 = vld [vmem:[#allocation7 + $0x20] sm:$0xff]  ;;  %v915_v32 = vld [vmem:[#allocation8 + $0x70] sm:$0xff] }
  0x7e   : > { %1399 = vmatprep.subr.mxu0 %v1851_v0  ;;  %1434 = vmatprep.subr.mxu1 %v1851_v0 }
  0x7f   : > { %1400 = vmatpush3.msra.mxu0 %v509_v28  ;;  %1435 = vmatpush3.msra.mxu1 %v599_v33  ;;  %v814_v28 = vld [vmem:[#allocation7 + $0x10] sm:$0xff]  ;;  %v914_v33 = vld [vmem:[#allocation8 + $0x68] sm:$0xff] }
  0x80   : > { %1402 = vmatmul.mubr.f32.vlgmr.msra.gmra.mxu0 %v508_v30  ;;  %1439 = vmatprep.subr.mxu1 %v1851_v0  ;;  %v812_v30 = vld [vmem:[#allocation7] sm:$0xff] }
  0x81   : > { %795 = vmatprep.mubr.f32.mxu0 %v1851_v0  ;;  %731 = vmatprep.subr.mxu0 %v719_v34  ;;  %v913_v34 = vld [vmem:[#allocation8 + $0x60] sm:$0xff] }
  0x82   : > { %732 = vmatpush1.msra.mxu0 %v718_v35  ;;  %v912_v35 = vld [vmem:[#allocation8 + $0x58] sm:$0xff] }
  0x83   : > { %733 = vmatprep.subr.mxu0 %v717_v36  ;;  %v911_v36 = vld [vmem:[#allocation8 + $0x50] sm:$0xff] }
  0x84   : > { %734 = vmatpush1.msra.mxu0 %v716_v37  ;;  %v910_v37 = vld [vmem:[#allocation8 + $0x48] sm:$0xff] }
  0x85   : > { %735 = vmatprep.subr.mxu0 %v715_v38  ;;  %v909_v38 = vld [vmem:[#allocation8 + $0x40] sm:$0xff] }
  0x86   : > { %736 = vmatpush1.msra.mxu0 %v714_v39  ;;  %v908_v39 = vld [vmem:[#allocation8 + $0x38] sm:$0xff] }
  0x87   : > { %737 = vmatprep.subr.mxu0 %v713_v40  ;;  %v907_v40 = vld [vmem:[#allocation8 + $0x30] sm:$0xff] }
  0x88   : > { %738 = vmatpush1.msra.mxu0 %v712_v41  ;;  %v906_v41 = vld [vmem:[#allocation8 + $0x28] sm:$0xff] }
  0x89   : > { %739 = vmatprep.subr.mxu0 %v711_v42  ;;  %v905_v42 = vld [vmem:[#allocation8 + $0x20] sm:$0xff] }
  0x8a   : > { %740 = vmatpush1.msra.mxu0 %v710_v43  ;;  %v904_v43 = vld [vmem:[#allocation8 + $0x18] sm:$0xff] }
  0x8b   : > { %741 = vmatprep.subr.mxu0 %v709_v44  ;;  %v721_v44 = vlaneseq }
  0x8c   : > { %742 = vmatpush1.msra.mxu0 %v708_v45 }
  0x8d   : > { %743 = vmatprep.subr.mxu0 %v707_v46  ;;  %v722_v45 = vshrl.u32 %v721_v44, 7 }
  0x8e   : > { %744 = vmatpush1.msra.mxu0 %v706_v47  ;;  %v1277_v47 = vld [vmem:[%s2319_s9 + $0x1] ss:$8 sm:$0x3] }
  0x8f   : > { %745 = vmatprep.subr.mxu0 %v705_v48  ;;  %v723_v46 = vsub.s32 0, %v722_v45  ;;  %v727_v48 = vsub.s32 1, %v722_v45 }
  0x90   : > { %746 = vmatpush1.msra.mxu0 %v704_v49 }
  0x91   : > { %747 = vmatprep.subr.mxu0 %v703_v50  ;;  %v724_v49 = vrot.slane %v1277_v47, %v723_v46  ;;  %v728_v50 = vrot.slane %v1277_v47, %v727_v48 }
  0x92   : > { %748 = vmatpush1.msra.mxu0 %v702_v51 }
  0x93   : > { %749 = vmatprep.subr.mxu0 %v701_v52 }
  0x94   : > { %750 = vmatpush1.msra.mxu0 %v700_v53 }
  0x95   : > { %751 = vmatprep.subr.mxu0 %v699_v54 }
  0x96   : > { %752 = vmatpush1.msra.mxu0 %v698_v55 }
  0x97   : > { %753 = vmatprep.subr.mxu0 %v697_v56 }
  0x98   : > { %754 = vmatpush1.msra.mxu0 %v696_v57 }
  0x99   : > { %755 = vmatprep.subr.mxu0 %v695_v58  ;;  %v804_v58 = vld [vmem:[%s496_s29] sm:$0xff]  ;;  %s2275_s29 = scalar_lea.hbm %s2321_s11, %s1280_s12 }
  0x9a   : > { %756 = vmatpush1.msra.mxu0 %v694_v59 }
  0x9b   : > { %757 = vmatprep.subr.mxu0 %v693_v3  ;;  %v1004_v3 = vld [vmem:[#allocation10 + $0x70] sm:$0xff] }
  0x9c   : > { %758 = vmatpush1.msra.mxu0 %v692_v4  ;;  %v1003_v4 = vld [vmem:[#allocation10 + $0x68] sm:$0xff] }
  0x9d   : > { %759 = vmatprep.subr.mxu0 %v691_v5  ;;  %v1002_v5 = vld [vmem:[#allocation10 + $0x60] sm:$0xff] }
  0x9e   : > { %760 = vmatpush1.msra.mxu0 %v690_v6  ;;  %v1001_v6 = vld [vmem:[#allocation10 + $0x58] sm:$0xff] }
  0x9f   : > { %761 = vmatprep.subr.mxu0 %v689_v7  ;;  %v1000_v7 = vld [vmem:[#allocation10 + $0x50] sm:$0xff] }
  0xa0   : > { %762 = vmatpush1.msra.mxu0 %v688_v8  ;;  %v999_v8 = vld [vmem:[#allocation10 + $0x48] sm:$0xff] }
  0xa1   : > { %1474 = vmatprep.subr.mxu0 %v1851_v0 }
 0x140   : > { %v592_v61 = vpop.f32.mrf.mxu0 }
 0x141   : > { %v593_v62 = vadd.f32 %v592_v61, %v525_v60 }
 0x142   : > { %v1403_v63 = vpop.f32.mrf.mxu0 }
 0x143   : > { %v597_v1 = vmul.f32 0.01, %v593_v62  ;;  %vm596_vm1 = vcmp.ge.f32.partialorder %v593_v62, 0.0  ;;  %v902_v63 = vld [vmem:[#allocation8 + $0x8] sm:$0xff] }
 0x145   : > { %v598_v2 = vsel %vm596_vm1, %v593_v62, %v597_v1  ;;  %v903_v62 = vld [vmem:[#allocation8 + $0x10] sm:$0xff]  ;;  %v901_v1 = vld [vmem:[#allocation8] sm:$0xff] }
 0x146   : > { %1437 = vmatmul.mubr.f32.vlgmr.msra.gmra.mxu1 %v598_v2  ;;  %v1005_v2 = vld [vmem:[#allocation10 + $0x78] sm:$0xff] }
 0x147   : > { %1471 = vmatprep.mubr.msk.f32.mxu1 %vm1852_vm0, %v1851_v0  ;;  %1440 = vmatpush3.msra.mxu1 %v827_v9  ;;  %v998_v9 = vld [vmem:[#allocation10 + $0x40] sm:$0xff] }
 0x148   : > { %1441 = vmatprep.subr.mxu1 %v1851_v0 }
 0x149   : > { %1442 = vmatpush3.msra.mxu1 %v826_v16 }
 0x14a   : > { %1443 = vmatprep.subr.mxu1 %v1851_v0 }
 0x14b   : > { %1444 = vmatpush3.msra.mxu1 %v825_v17 }
 0x14c   : > { %1445 = vmatprep.subr.mxu1 %v1851_v0 }
 0x14d   : > { %1446 = vmatpush3.msra.mxu1 %v824_v18 }
 0x14e   : > { %1447 = vmatprep.subr.mxu1 %v1851_v0 }
 0x14f   : > { %1448 = vmatpush3.msra.mxu1 %v823_v19 }
 0x150   : > { %1449 = vmatprep.subr.mxu1 %v1851_v0 }
 0x151   : > { %1450 = vmatpush3.msra.mxu1 %v822_v20 }
 0x152   : > { %1451 = vmatprep.subr.mxu1 %v1851_v0 }
 0x153   : > { %1452 = vmatpush3.msra.mxu1 %v821_v21  ;;  %v992_v21 = vld [vmem:[#allocation10 + $0x10] sm:$0xff] }
 0x154   : > { %1453 = vmatprep.subr.mxu1 %v1851_v0 }
 0x155   : > { %1454 = vmatpush3.msra.mxu1 %v820_v22  ;;  %v991_v22 = vld [vmem:[#allocation10 + $0x8] sm:$0xff] }
 0x156   : > { %1455 = vmatprep.subr.mxu1 %v1851_v0 }
 0x157   : > { %1456 = vmatpush3.msra.mxu1 %v819_v23  ;;  %v990_v23 = vld [vmem:[#allocation10] sm:$0xff] }
 0x158   : > { %1457 = vmatprep.subr.mxu1 %v1851_v0 }
 0x159   : > { %1458 = vmatpush3.msra.mxu1 %v818_v24  ;;  %v506_v24 = vld [vmem:[%s2319_s9 + $0x3] ss:$0 sm:$0xff] }
 0x15a   : > { %1459 = vmatprep.subr.mxu1 %v1851_v0 }
 0x15b   : > { %1460 = vmatpush3.msra.mxu1 %v817_v25 }
 0x15c   : > { %1461 = vmatprep.subr.mxu1 %v1851_v0 }
 0x15d   : > { %1462 = vmatpush3.msra.mxu1 %v816_v26 }
 0x15e   : > { %1463 = vmatprep.subr.mxu1 %v1851_v0 }
 0x15f   : > { %1464 = vmatpush3.msra.mxu1 %v815_v27 }
 0x160   : > { %1465 = vmatprep.subr.mxu1 %v1851_v0 }
 0x161   : > { %1466 = vmatpush3.msra.mxu1 %v814_v28 }
 0x162   : > { %1467 = vmatprep.subr.mxu1 %v1851_v0 }
 0x163   : > { %1468 = vmatpush3.msra.mxu1 %v813_v29 }
 0x164   : > { %1469 = vmatprep.subr.mxu1 %v1851_v0 }
 0x165   : > { %1470 = vmatpush3.msra.mxu1 %v812_v30  ;;  %v507_v30 = vld [vmem:[%s2319_s9 + $0x4] ss:$0 sm:$0xff] }
 0x166   : > { %1509 = vmatprep.subr.mxu1 %v1851_v0 }
 0x206   : > { %v681_v11 = vpop.f32.mrf.mxu1 }
 0x207   : > { %v682_v12 = vadd.f32 %v681_v11, %v502_v10  ;;  %v997_v10 = vld [vmem:[#allocation10 + $0x38] sm:$0xff]  ;;  %v996_v11 = vld [vmem:[#allocation10 + $0x30] sm:$0xff] }
 0x208   : > { %v1438_v13 = vpop.f32.mrf.mxu1 }
 0x209   : > { %vm685_vm2 = vcmp.ge.f32.partialorder %v682_v12, 0.0  ;;  %v686_v14 = vmul.f32 0.01, %v682_v12  ;;  %v994_v13 = vld [vmem:[#allocation10 + $0x20] sm:$0xff] }
 0x20b   : > { %v687_v15 = vsel %vm685_vm2, %v682_v12, %v686_v14  ;;  %v995_v12 = vld [vmem:[#allocation10 + $0x28] sm:$0xff]  ;;  %v993_v14 = vld [vmem:[#allocation10 + $0x18] sm:$0xff] }
 0x20c   : > { %796 = vmatmul.mubr.f32.vlgmr.msra.gmra.mxu0 %v687_v15  ;;  %v505_v15 = vld [vmem:[%s2319_s9 + $0x2] ss:$0 sm:$0xff] }
 0x20d   : > { %1506 = vmatprep.mubr.msk.f32.mxu0 %vm1852_vm0, %v1851_v0  ;;  %1475 = vmatpush3.msra.mxu0 %v916_v31 }
 0x20e   : > { %1476 = vmatprep.subr.mxu0 %v1851_v0 }
 0x20f   : > { %1477 = vmatpush3.msra.mxu0 %v915_v32 }
 0x210   : > { %1478 = vmatprep.subr.mxu0 %v1851_v0 }
 0x211   : > { %1479 = vmatpush3.msra.mxu0 %v914_v33 }
 0x212   : > { %1480 = vmatprep.subr.mxu0 %v1851_v0 }
 0x213   : > { %1481 = vmatpush3.msra.mxu0 %v913_v34 }
 0x214   : > { %1482 = vmatprep.subr.mxu0 %v1851_v0 }
 0x215   : > { %1483 = vmatpush3.msra.mxu0 %v912_v35 }
 0x216   : > { %1484 = vmatprep.subr.mxu0 %v1851_v0 }
 0x217   : > { %1485 = vmatpush3.msra.mxu0 %v911_v36 }
 0x218   : > { %1486 = vmatprep.subr.mxu0 %v1851_v0 }
 0x219   : > { %1487 = vmatpush3.msra.mxu0 %v910_v37 }
 0x21a   : > { %1488 = vmatprep.subr.mxu0 %v1851_v0 }
 0x21b   : > { %1489 = vmatpush3.msra.mxu0 %v909_v38 }
 0x21c   : > { %1490 = vmatprep.subr.mxu0 %v1851_v0 }
 0x21d   : > { %1491 = vmatpush3.msra.mxu0 %v908_v39 }
 0x21e   : > { %1492 = vmatprep.subr.mxu0 %v1851_v0 }
 0x21f   : > { %1493 = vmatpush3.msra.mxu0 %v907_v40 }
 0x220   : > { %1494 = vmatprep.subr.mxu0 %v1851_v0 }
 0x221   : > { %1495 = vmatpush3.msra.mxu0 %v906_v41 }
 0x222   : > { %1496 = vmatprep.subr.mxu0 %v1851_v0 }
 0x223   : > { %1497 = vmatpush3.msra.mxu0 %v905_v42 }
 0x224   : > { %1498 = vmatprep.subr.mxu0 %v1851_v0 }
 0x225   : > { %1499 = vmatpush3.msra.mxu0 %v904_v43 }
 0x226   : > { %1500 = vmatprep.subr.mxu0 %v1851_v0 }
 0x227   : > { %1501 = vmatpush3.msra.mxu0 %v903_v62 }
 0x228   : > { %1502 = vmatprep.subr.mxu0 %v1851_v0 }
 0x229   : > { %1503 = vmatpush3.msra.mxu0 %v902_v63 }
 0x22a   : > { %1504 = vmatprep.subr.mxu0 %v1851_v0 }
 0x22b   : > { %1505 = vmatpush3.msra.mxu0 %v901_v1 }
 0x2cc   : > { %v797_v51 = vpop.f32.mrf.mxu0 }
 0x2cd   : > { %v798_v52 = vadd.f32 %v797_v51, %v724_v49 }
 0x2ce   : > { %v799_v53 = vpop.f32.mrf.mxu0 }
 0x2cf   : > { %802 = vst [vmem:[%s501_s16] sm:$0xff] %v798_v52  ;;  %v800_v54 = vadd.f32 %v799_v53, %v728_v50 }
 0x2d1   : > { %803 = vst [vmem:[%s501_s16 + $0x8] sm:$0xff] %v800_v54  ;;  %v1278_v55 = vclamps-f32 %v800_v54, 10.0  ;;  %s1099_s16 = sshll.u32 %s484_s15, 4  ;;  %s1100_s16 = int_to_ptr.vmem [resolvable:$true] %s1099_s16 }
 0x2d2   : > { %s1770_s26 = scalar_lea.vmem %s1100_s16, 128  ;;  %p1777_p7 = scmp.lt.s32.totalorder %s1100_s16, %s1775_s21 }
 0x2d3   : > { %v807_v56 = vmul.f32 0.5, %v1278_v55  ;;  %p1771_p4 = scmp.ne.s32.totalorder %s1100_s16, %s1770_s26  ;;  %p1778_p11 = scmp.lt.s32.totalorder %s1776_s4, %s1770_s26 }
 0x2d5   : > { %v808_v57 = vmul.f32 1.442695, %v807_v56  ;;  %p1772_p9 = pnand %p1771_p4, %p1952_p5  ;;  %p1779_p13 = por %p1778_p11, %p1777_p7 }
 0x2d7   : > { %1638 = vpow2.f32 %v808_v57  ;;  %p1773_p8 = pneg %p1772_p9 }
 0x2d9   : > { %p1780_p0 = pnand %p1779_p13, %p1773_p8 }
 0x2e4   : > { %v1639_v59 = vpop.eup %1638 }
 0x2e5   : > { %v810_v60 = vmul.f32 %v1639_v59, %v804_v58 }
 0x2e7   : > { %v811_v61 = vadd.f32 %v810_v60, %v798_v52 }
 0x2e9   : > { %1472 = vmatmul.mubr.f32.vlgmr.msra.gmra.mxu1 %v811_v61 }
 0x2ea   : > { %1541 = vmatprep.mubr.msk.f32.mxu1 %vm1852_vm0, %v1851_v0  ;;  %1510 = vmatpush3.msra.mxu1 %v1005_v2 }
 0x2eb   : > { %1511 = vmatprep.subr.mxu1 %v1851_v0 }
 0x2ec   : > { %1512 = vmatpush3.msra.mxu1 %v1004_v3 }
 0x2ed   : > { %1513 = vmatprep.subr.mxu1 %v1851_v0 }
 0x2ee   : > { %1514 = vmatpush3.msra.mxu1 %v1003_v4 }
 0x2ef   : > { %1515 = vmatprep.subr.mxu1 %v1851_v0 }
 0x2f0   : > { %1516 = vmatpush3.msra.mxu1 %v1002_v5 }
 0x2f1   : > { %1517 = vmatprep.subr.mxu1 %v1851_v0 }
 0x2f2   : > { %1518 = vmatpush3.msra.mxu1 %v1001_v6 }
 0x2f3   : > { %1519 = vmatprep.subr.mxu1 %v1851_v0 }
 0x2f4   : > { %1520 = vmatpush3.msra.mxu1 %v1000_v7 }
 0x2f5   : > { %1521 = vmatprep.subr.mxu1 %v1851_v0 }
 0x2f6   : > { %1522 = vmatpush3.msra.mxu1 %v999_v8 }
 0x2f7   : > { %1523 = vmatprep.subr.mxu1 %v1851_v0 }
 0x2f8   : > { %1524 = vmatpush3.msra.mxu1 %v998_v9 }
 0x2f9   : > { %1525 = vmatprep.subr.mxu1 %v1851_v0 }
 0x2fa   : > { %1526 = vmatpush3.msra.mxu1 %v997_v10 }
 0x2fb   : > { %1527 = vmatprep.subr.mxu1 %v1851_v0 }
 0x2fc   : > { %1528 = vmatpush3.msra.mxu1 %v996_v11 }
 0x2fd   : > { %1529 = vmatprep.subr.mxu1 %v1851_v0 }
 0x2fe   : > { %1530 = vmatpush3.msra.mxu1 %v995_v12 }
 0x2ff   : > { %1531 = vmatprep.subr.mxu1 %v1851_v0 }
 0x300   : > { %1532 = vmatpush3.msra.mxu1 %v994_v13 }
 0x301   : > { %1533 = vmatprep.subr.mxu1 %v1851_v0 }
 0x302   : > { %1534 = vmatpush3.msra.mxu1 %v993_v14 }
 0x303   : > { %1535 = vmatprep.subr.mxu1 %v1851_v0 }
 0x304   : > { %1536 = vmatpush3.msra.mxu1 %v992_v21 }
 0x305   : > { %1537 = vmatprep.subr.mxu1 %v1851_v0 }
 0x306   : > { %1538 = vmatpush3.msra.mxu1 %v991_v22 }
 0x307   : > { %1539 = vmatprep.subr.mxu1 %v1851_v0 }
 0x308   : > { %1540 = vmatpush3.msra.mxu1 %v990_v23 }
 0x3a9   : > { %v894_v16 = vpop.f32.mrf.mxu1 }
 0x3aa   : > { %v895_v17 = vadd.f32 %v894_v16, %v505_v15 }
 0x3ab   : > { %v1473_v18 = vpop.f32.mrf.mxu1 }
 0x3ac   : > { %vm898_vm3 = vcmp.ge.f32.partialorder %v895_v17, 0.0  ;;  %v899_v19 = vmul.f32 0.01, %v895_v17 }
 0x3ae   : > { %v900_v20 = vsel %vm898_vm3, %v895_v17, %v899_v19 }
 0x3af   : > { %1507 = vmatmul.mubr.f32.vlgmr.msra.gmra.mxu0 %v900_v20 }
 0x46f   : > { %v983_v25 = vpop.f32.mrf.mxu0 }
 0x470   : > { %v984_v26 = vadd.f32 %v983_v25, %v506_v24 }
 0x471   : > { %v1508_v27 = vpop.f32.mrf.mxu0 }
 0x472   : > { %vm987_vm4 = vcmp.ge.f32.partialorder %v984_v26, 0.0  ;;  %v988_v28 = vmul.f32 0.01, %v984_v26 }
 0x474   : > { %v989_v29 = vsel %vm987_vm4, %v984_v26, %v988_v28 }
 0x475   : > { %1542 = vmatmul.mubr.f32.vlgmr.msra.gmra.mxu1 %v989_v29 }
 0x535   : > { %v1072_v0 = vpop.f32.mrf.mxu1 }
 0x536   : > { %v1073_v31 = vadd.f32 %v1072_v0, %v507_v30 }
 0x537   : > { %v1543_v32 = vpop.f32.mrf.mxu1 }
 0x538   : > { %1076 = vst [vmem:[%s484_s15] sm:$0xff] %v1073_v31 }
 0x539   : > { %1783 = shalt.err (!%p1780_p0)
}
 0x53a   : > { %s1784_s24 = scalar_lea.hbm %s2275_s29, 128  ;;  %s1788_s14 = scalar_lea.hbm %s2321_s11, 256 }
 0x53b   : > { %p1785_p3 = scmp.ne.s32.totalorder %s2275_s29, %s1784_s24  ;;  %p1789_p12 = scmp.lt.s32.totalorder %s2275_s29, %s2321_s11 }
 0x53c   : > { %p1790_p10 = scmp.lt.s32.totalorder %s1788_s14, %s1784_s24 }
 0x53d   : > { %p1786_p1 = pnand %p1785_p3, %p1952_p5 }
 0x53e   : > { %p1791_p4 = por %p1790_p10, %p1789_p12 }
 0x53f   : > { %p1787_p2 = pneg %p1786_p1 }
 0x541   : > { %p1792_p9 = pnand %p1791_p4, %p1787_p2 }
 0x543   : > { %1795 = shalt.err (!%p1792_p9)
}
 0x544   : > { %1564 = dma.vmem_to_hbm [thread:$0]  (%p1952_p5), %s1100_s16, 128, %s2275_s29, %s1083_s13  }
 0x545 PF: > { %p1596_p8 = scmp.ge.s32.totalorder %s1842_s20, 2  ;;  %s1119_s25 = sand.u32 1, %s1830_s17  }
 0x546   : > { %s1120_s22 = scalar_lea.sflag [#allocation4], %s1119_s25 }
 0x547   : > { %p1583_p7 = pnand %p1596_p8, %p1956_p6 }
 0x549   : > { %p1584_p11 = pneg %p1583_p7 }
 0x54b   : > { %1825 = dma.done.wait (%p1584_p11), %s1120_s22, 128  }
 0x54c   : > { %1827 = vsyncadd (%p1584_p11), %s1120_s22, 4294967168  ;;  %s2342_s20 = sld [smem:[#allocation17_spill]]  ;;  %s2345_s17 = smov %s1834_s18 }
 0x54d   : > { %s2343_s26 = sld [smem:[#allocation16_spill]] }
 0x54e   : > { %s2344_s19 = sld [smem:[#allocation18_spill]] }
 0x552   : > { %p25_p13 = scmp.ge.s32.totalorder %s2342_s20, 4  }
 0x553   : > { %s2346_s18 = smov %s2343_s26 }
 0x554   :  { %27 = sbr.rel (!%p25_p13) target bundleno = 8 (0x8), region = 135 }
 0x559   :  { %1125 = vsyncpa [#allocation3], 1 }
 0x55a   :  { %1127 = vsyncpa [#allocation3 + $0x1], 1 }
 0x55b   :  { %1128 = vsyncpa [#allocation6], 1 }
 0x55c   :  { %1129 = vsyncpa [#allocation9], 1 }
 0x55d   :  { %1130 = vsyncpa [#allocation4], 1 }
 0x55e   :  { %1132 = vsyncpa [#allocation4 + $0x1], 1 }

</bundles_post_ra>
